<compile_context>
chip_gen: v7x
topology: tpu7x:2x2x1
jax: 0.10.0
libtpu: 0.0.40
codegen_flags: <defaults>
</compile_context>

<pallas_src>
import jax
import jax.numpy as jnp
from jax.experimental import pallas as pl
from jax.experimental.pallas import tpu as pltpu

MSG_LEN = 16
KEY_LEN = 16
F = MSG_LEN + KEY_LEN          # Linear feature dim (32)
L_OUT = (F - 1) // 2 + 1       # length after stride-2 conv1 (16)

# Offsets into the concatenated conv-scalar table (41 scalars total).
_W0, _B0 = 0, 2                # conv0: w (2), b (2)
_W1, _B1 = 4, 12               # conv1: w (4x2=8), b (4)
_W2, _B2 = 16, 32              # conv2: w (4x4=16), b (4)
_W3, _B3 = 36, 40              # conv3: w (4), b (1)


def communicate_kernel(cw_ref, x_ref, wt_ref, b_ref, o_ref):
    # cw_ref: (41,) SMEM scalar table (scalar prefetch).
    # x_ref : (TB, F) VMEM,   wt_ref: (F, L_OUT) pre-transposed, even rows only.
    # b_ref : (1, L_OUT),     o_ref : (TB, L_OUT).

    # ---- Linear (even outputs only) + Sigmoid ------------------------------
    y = jnp.dot(x_ref[...], wt_ref[...], preferred_element_type=jnp.float32)
    y = jax.nn.sigmoid(y + b_ref[...])                       # (TB, L_OUT)

    # ---- conv0: Conv1d(1 -> 2, k=1) + ReLU (pointwise) ---------------------
    h0 = [jnp.maximum(cw_ref[_W0 + c] * y + cw_ref[_B0 + c], 0.0)
          for c in range(2)]

    # ---- conv1: Conv1d(2 -> 4, k=1, stride=2) + ReLU -----------------------
    # (stride-2 already realized by the even-row Linear slice.)
    h1 = [jnp.maximum(cw_ref[_W1 + o * 2 + 0] * h0[0]
                      + cw_ref[_W1 + o * 2 + 1] * h0[1]
                      + cw_ref[_B1 + o], 0.0)
          for o in range(4)]

    # ---- conv2: Conv1d(4 -> 4, k=1) + ReLU ---------------------------------
    h2 = [jnp.maximum(sum(cw_ref[_W2 + o * 4 + i] * h1[i] for i in range(4))
                      + cw_ref[_B2 + o], 0.0)
          for o in range(4)]

    # ---- conv3: Conv1d(4 -> 1, k=1) + tanh, then squeeze -------------------
    out = jnp.tanh(sum(cw_ref[_W3 + i] * h2[i] for i in range(4))
                   + cw_ref[_B3])
    o_ref[...] = out                                          # (TB, L_OUT)


def communicate_net(x, params, *, tile_b=128):
    (win, bin_, w0f, b0, w1f, b1, w2f, b2, w3f, b3) = params
    B = x.shape[0]

    # --- wrapper-side param prep (one-time, outside the kernel) -------------
    # Slice the Linear to its even output rows and pre-transpose.
    wt_even = jnp.transpose(win[::2, :])                      # (F, L_OUT)
    b_even = bin_[::2].reshape(1, L_OUT)                      # (1, L_OUT)
    # Concatenate all 41 conv scalars into one 1-D SMEM table.
    cw = jnp.concatenate([w0f, b0,
                          w1f.reshape(-1), b1,
                          w2f.reshape(-1), b2,
                          w3f, b3]).astype(jnp.float32)       # (41,)

    # --- batch tiling --------------------------------------------------------
    tb = min(tile_b, max(8, ((B + 7) // 8) * 8))              # sublane-aligned
    grid = (pl.cdiv(B, tb),)

    grid_spec = pltpu.PrefetchScalarGridSpec(
        num_scalar_prefetch=1,
        grid=grid,
        in_specs=[
            pl.BlockSpec((tb, F), lambda i, cw: (i, 0)),        # x tile
            pl.BlockSpec((F, L_OUT), lambda i, cw: (0, 0)),     # weight (whole)
            pl.BlockSpec((1, L_OUT), lambda i, cw: (0, 0)),     # bias (whole)
        ],
        out_specs=pl.BlockSpec((tb, L_OUT), lambda i, cw: (i, 0)),
    )

    # TODO(synk): for very large B, a lane-dense (L_OUT, TILE_B) output layout
    # would avoid 16/128 masked stores; kept (B, L_OUT) to match module output.
    return pl.pallas_call(
        communicate_kernel,
        out_shape=jax.ShapeDtypeStruct((B, L_OUT), jnp.float32),
        grid_spec=grid_spec,
        compiler_params=pltpu.CompilerParams(
            dimension_semantics=("parallel",)),
    )(cw, x, wt_even, b_even)


def init_params(key):
    """Deterministic init mimicking torch's default uniform(-1/sqrt(fan_in))."""
    ks = jax.random.split(key, 10)

    def u(k, shape, fan_in):
        b = 1.0 / jnp.sqrt(jnp.float32(fan_in))
        return jax.random.uniform(k, shape, jnp.float32, -b, b)

    win = u(ks[0], (F, F), F)          # nn.Linear(F, F).weight
    bin_ = u(ks[1], (F,), F)
    w0 = u(ks[2], (2, 1, 1), 1)        # Conv1d(1, 2, 1)
    b0 = u(ks[3], (2,), 1)
    w1 = u(ks[4], (4, 2, 1), 2)        # Conv1d(2, 4, 1, stride=2)
    b1 = u(ks[5], (4,), 2)
    w2 = u(ks[6], (4, 4, 1), 4)        # Conv1d(4, 4, 1)
    b2 = u(ks[7], (4,), 4)
    w3 = u(ks[8], (1, 4, 1), 4)        # Conv1d(4, 1, 1)
    b3 = u(ks[9], (1,), 4)
    # flatten k=1 conv weights
    return (win, bin_, w0[:, 0, 0], b0, w1[:, :, 0], b1,
            w2[:, :, 0], b2, w3[0, :, 0], b3)


def reference(x, params):
    """Pure-JAX replica of the torch forward (NCL conv semantics)."""
    (win, bin_, w0f, b0, w1f, b1, w2f, b2, w3f, b3) = params
    y = jax.nn.sigmoid(x @ win.T + bin_)                          # (B, F)
    h0 = jnp.maximum(w0f[None, :, None] * y[:, None, :]
                     + b0[None, :, None], 0.0)                    # (B, 2, F)
    h0s = h0[:, :, ::2]                                           # stride 2
    h1 = jnp.maximum(jnp.einsum('oi,bil->bol', w1f, h0s)
                     + b1[None, :, None], 0.0)                    # (B, 4, L)
    h2 = jnp.maximum(jnp.einsum('oi,bil->bol', w2f, h1)
                     + b2[None, :, None], 0.0)                    # (B, 4, L)
    out = jnp.tanh(jnp.einsum('i,bil->bl', w3f, h2) + b3[0])      # (B, L)
    return out


if __name__ == "__main__":
    key = jax.random.PRNGKey(0)
    kp, kx = jax.random.split(key)
    params = init_params(kp)

    B = 32
    x = jax.random.normal(kx, (B, F), jnp.float32)

    # small tile so the batch grid (and parallel axis) is actually exercised
    out = communicate_net(x, params, tile_b=8)
    out = jax.block_until_ready(out)

    ref = reference(x, params)
    assert out.shape == (B, L_OUT), out.shape
    assert jnp.allclose(out, ref, atol=1e-5, rtol=1e-5), \
        float(jnp.max(jnp.abs(out - ref)))
    print("KERNEL_OK")
</pallas_src>

<mosaic_0001>
module attributes {stable_mosaic.version = 11 : i64} {
  func.func @communicate_kernel(%arg0: i32, %arg1: memref<41xf32, #tpu.memory_space<smem>>, %arg2: memref<8x32xf32, #tpu.memory_space<vmem>>, %arg3: memref<32x16xf32, #tpu.memory_space<vmem>>, %arg4: memref<1x16xf32, #tpu.memory_space<vmem>>, %arg5: memref<8x16xf32, #tpu.memory_space<vmem>>) attributes {dimension_semantics = [#tpu.dimension_semantics<parallel>], iteration_bounds = array<i64: 4>, scalar_prefetch = 1 : i64, scratch_operands = 0 : i64, tpu.core_type = #tpu.core_type<tc>, window_params = [{transform_indices = @transform_0, window_bounds = array<i64: 8, 32>}, {pipeline_mode = #tpu.pipeline_mode<synchronous>, transform_indices = @transform_1, window_bounds = array<i64: 32, 16>}, {pipeline_mode = #tpu.pipeline_mode<synchronous>, transform_indices = @transform_2, window_bounds = array<i64: 1, 16>}, {transform_indices = @transform_3, window_bounds = array<i64: 8, 16>}]} {
    %c0 = arith.constant 0 : index
    %c0_0 = arith.constant 0 : index
    %0 = vector.load %arg2[%c0, %c0_0] : memref<8x32xf32, #tpu.memory_space<vmem>>, vector<8x32xf32>
    %c0_1 = arith.constant 0 : index
    %c0_2 = arith.constant 0 : index
    %1 = vector.load %arg3[%c0_1, %c0_2] : memref<32x16xf32, #tpu.memory_space<vmem>>, vector<32x16xf32>
    %cst = arith.constant dense<0.000000e+00> : vector<8x16xf32>
    %2 = tpu.matmul %0, %1, %cst {dimension_numbers = #tpu.dot_dimension_numbers<[1], [0], [0], [1], [0, 0, 1, 1], [], []>} : vector<8x32xf32>, vector<32x16xf32>, vector<8x16xf32> -> vector<8x16xf32>
    %c0_3 = arith.constant 0 : index
    %c0_4 = arith.constant 0 : index
    %3 = vector.load %arg4[%c0_3, %c0_4] : memref<1x16xf32, #tpu.memory_space<vmem>>, vector<1x16xf32>
    %4 = vector.broadcast %3 : vector<1x16xf32> to vector<8x16xf32>
    %5 = arith.addf %2, %4 : vector<8x16xf32>
    %6 = arith.negf %5 : vector<8x16xf32>
    %7 = math.exp %6 : vector<8x16xf32>
    %cst_5 = arith.constant 1.000000e+00 : f32
    %8 = vector.broadcast %cst_5 : f32 to vector<8x16xf32>
    %9 = arith.addf %8, %7 : vector<8x16xf32>
    %10 = arith.divf %8, %9 : vector<8x16xf32>
    %c0_6 = arith.constant 0 : index
    %11 = memref.load %arg1[%c0_6] : memref<41xf32, #tpu.memory_space<smem>>
    %12 = vector.broadcast %11 : f32 to vector<8x16xf32>
    %13 = arith.mulf %12, %10 : vector<8x16xf32>
    %c2 = arith.constant 2 : index
    %14 = memref.load %arg1[%c2] : memref<41xf32, #tpu.memory_space<smem>>
    %15 = vector.broadcast %14 : f32 to vector<8x16xf32>
    %16 = arith.addf %13, %15 : vector<8x16xf32>
    %cst_7 = arith.constant 0.000000e+00 : f32
    %17 = vector.broadcast %cst_7 : f32 to vector<8x16xf32>
    %18 = arith.maximumf %16, %17 : vector<8x16xf32>
    %c1 = arith.constant 1 : index
    %19 = memref.load %arg1[%c1] : memref<41xf32, #tpu.memory_space<smem>>
    %20 = vector.broadcast %19 : f32 to vector<8x16xf32>
    %21 = arith.mulf %20, %10 : vector<8x16xf32>
    %c3 = arith.constant 3 : index
    %22 = memref.load %arg1[%c3] : memref<41xf32, #tpu.memory_space<smem>>
    %23 = vector.broadcast %22 : f32 to vector<8x16xf32>
    %24 = arith.addf %21, %23 : vector<8x16xf32>
    %cst_8 = arith.constant 0.000000e+00 : f32
    %25 = vector.broadcast %cst_8 : f32 to vector<8x16xf32>
    %26 = arith.maximumf %24, %25 : vector<8x16xf32>
    %c4 = arith.constant 4 : index
    %27 = memref.load %arg1[%c4] : memref<41xf32, #tpu.memory_space<smem>>
    %28 = vector.broadcast %27 : f32 to vector<8x16xf32>
    %29 = arith.mulf %28, %18 : vector<8x16xf32>
    %c5 = arith.constant 5 : index
    %30 = memref.load %arg1[%c5] : memref<41xf32, #tpu.memory_space<smem>>
    %31 = vector.broadcast %30 : f32 to vector<8x16xf32>
    %32 = arith.mulf %31, %26 : vector<8x16xf32>
    %33 = arith.addf %29, %32 : vector<8x16xf32>
    %c12 = arith.constant 12 : index
    %34 = memref.load %arg1[%c12] : memref<41xf32, #tpu.memory_space<smem>>
    %35 = vector.broadcast %34 : f32 to vector<8x16xf32>
    %36 = arith.addf %33, %35 : vector<8x16xf32>
    %cst_9 = arith.constant 0.000000e+00 : f32
    %37 = vector.broadcast %cst_9 : f32 to vector<8x16xf32>
    %38 = arith.maximumf %36, %37 : vector<8x16xf32>
    %c6 = arith.constant 6 : index
    %39 = memref.load %arg1[%c6] : memref<41xf32, #tpu.memory_space<smem>>
    %40 = vector.broadcast %39 : f32 to vector<8x16xf32>
    %41 = arith.mulf %40, %18 : vector<8x16xf32>
    %c7 = arith.constant 7 : index
    %42 = memref.load %arg1[%c7] : memref<41xf32, #tpu.memory_space<smem>>
    %43 = vector.broadcast %42 : f32 to vector<8x16xf32>
    %44 = arith.mulf %43, %26 : vector<8x16xf32>
    %45 = arith.addf %41, %44 : vector<8x16xf32>
    %c13 = arith.constant 13 : index
    %46 = memref.load %arg1[%c13] : memref<41xf32, #tpu.memory_space<smem>>
    %47 = vector.broadcast %46 : f32 to vector<8x16xf32>
    %48 = arith.addf %45, %47 : vector<8x16xf32>
    %cst_10 = arith.constant 0.000000e+00 : f32
    %49 = vector.broadcast %cst_10 : f32 to vector<8x16xf32>
    %50 = arith.maximumf %48, %49 : vector<8x16xf32>
    %c8 = arith.constant 8 : index
    %51 = memref.load %arg1[%c8] : memref<41xf32, #tpu.memory_space<smem>>
    %52 = vector.broadcast %51 : f32 to vector<8x16xf32>
    %53 = arith.mulf %52, %18 : vector<8x16xf32>
    %c9 = arith.constant 9 : index
    %54 = memref.load %arg1[%c9] : memref<41xf32, #tpu.memory_space<smem>>
    %55 = vector.broadcast %54 : f32 to vector<8x16xf32>
    %56 = arith.mulf %55, %26 : vector<8x16xf32>
    %57 = arith.addf %53, %56 : vector<8x16xf32>
    %c14 = arith.constant 14 : index
    %58 = memref.load %arg1[%c14] : memref<41xf32, #tpu.memory_space<smem>>
    %59 = vector.broadcast %58 : f32 to vector<8x16xf32>
    %60 = arith.addf %57, %59 : vector<8x16xf32>
    %cst_11 = arith.constant 0.000000e+00 : f32
    %61 = vector.broadcast %cst_11 : f32 to vector<8x16xf32>
    %62 = arith.maximumf %60, %61 : vector<8x16xf32>
    %c10 = arith.constant 10 : index
    %63 = memref.load %arg1[%c10] : memref<41xf32, #tpu.memory_space<smem>>
    %64 = vector.broadcast %63 : f32 to vector<8x16xf32>
    %65 = arith.mulf %64, %18 : vector<8x16xf32>
    %c11 = arith.constant 11 : index
    %66 = memref.load %arg1[%c11] : memref<41xf32, #tpu.memory_space<smem>>
    %67 = vector.broadcast %66 : f32 to vector<8x16xf32>
    %68 = arith.mulf %67, %26 : vector<8x16xf32>
    %69 = arith.addf %65, %68 : vector<8x16xf32>
    %c15 = arith.constant 15 : index
    %70 = memref.load %arg1[%c15] : memref<41xf32, #tpu.memory_space<smem>>
    %71 = vector.broadcast %70 : f32 to vector<8x16xf32>
    %72 = arith.addf %69, %71 : vector<8x16xf32>
    %cst_12 = arith.constant 0.000000e+00 : f32
    %73 = vector.broadcast %cst_12 : f32 to vector<8x16xf32>
    %74 = arith.maximumf %72, %73 : vector<8x16xf32>
    %c16 = arith.constant 16 : index
    %75 = memref.load %arg1[%c16] : memref<41xf32, #tpu.memory_space<smem>>
    %76 = vector.broadcast %75 : f32 to vector<8x16xf32>
    %77 = arith.mulf %76, %38 : vector<8x16xf32>
    %cst_13 = arith.constant 0.000000e+00 : f32
    %78 = vector.broadcast %cst_13 : f32 to vector<8x16xf32>
    %79 = arith.addf %78, %77 : vector<8x16xf32>
    %c17 = arith.constant 17 : index
    %80 = memref.load %arg1[%c17] : memref<41xf32, #tpu.memory_space<smem>>
    %81 = vector.broadcast %80 : f32 to vector<8x16xf32>
    %82 = arith.mulf %81, %50 : vector<8x16xf32>
    %83 = arith.addf %79, %82 : vector<8x16xf32>
    %c18 = arith.constant 18 : index
    %84 = memref.load %arg1[%c18] : memref<41xf32, #tpu.memory_space<smem>>
    %85 = vector.broadcast %84 : f32 to vector<8x16xf32>
    %86 = arith.mulf %85, %62 : vector<8x16xf32>
    %87 = arith.addf %83, %86 : vector<8x16xf32>
    %c19 = arith.constant 19 : index
    %88 = memref.load %arg1[%c19] : memref<41xf32, #tpu.memory_space<smem>>
    %89 = vector.broadcast %88 : f32 to vector<8x16xf32>
    %90 = arith.mulf %89, %74 : vector<8x16xf32>
    %91 = arith.addf %87, %90 : vector<8x16xf32>
    %c32 = arith.constant 32 : index
    %92 = memref.load %arg1[%c32] : memref<41xf32, #tpu.memory_space<smem>>
    %93 = vector.broadcast %92 : f32 to vector<8x16xf32>
    %94 = arith.addf %91, %93 : vector<8x16xf32>
    %cst_14 = arith.constant 0.000000e+00 : f32
    %95 = vector.broadcast %cst_14 : f32 to vector<8x16xf32>
    %96 = arith.maximumf %94, %95 : vector<8x16xf32>
    %c20 = arith.constant 20 : index
    %97 = memref.load %arg1[%c20] : memref<41xf32, #tpu.memory_space<smem>>
    %98 = vector.broadcast %97 : f32 to vector<8x16xf32>
    %99 = arith.mulf %98, %38 : vector<8x16xf32>
    %cst_15 = arith.constant 0.000000e+00 : f32
    %100 = vector.broadcast %cst_15 : f32 to vector<8x16xf32>
    %101 = arith.addf %100, %99 : vector<8x16xf32>
    %c21 = arith.constant 21 : index
    %102 = memref.load %arg1[%c21] : memref<41xf32, #tpu.memory_space<smem>>
    %103 = vector.broadcast %102 : f32 to vector<8x16xf32>
    %104 = arith.mulf %103, %50 : vector<8x16xf32>
    %105 = arith.addf %101, %104 : vector<8x16xf32>
    %c22 = arith.constant 22 : index
    %106 = memref.load %arg1[%c22] : memref<41xf32, #tpu.memory_space<smem>>
    %107 = vector.broadcast %106 : f32 to vector<8x16xf32>
    %108 = arith.mulf %107, %62 : vector<8x16xf32>
    %109 = arith.addf %105, %108 : vector<8x16xf32>
    %c23 = arith.constant 23 : index
    %110 = memref.load %arg1[%c23] : memref<41xf32, #tpu.memory_space<smem>>
    %111 = vector.broadcast %110 : f32 to vector<8x16xf32>
    %112 = arith.mulf %111, %74 : vector<8x16xf32>
    %113 = arith.addf %109, %112 : vector<8x16xf32>
    %c33 = arith.constant 33 : index
    %114 = memref.load %arg1[%c33] : memref<41xf32, #tpu.memory_space<smem>>
    %115 = vector.broadcast %114 : f32 to vector<8x16xf32>
    %116 = arith.addf %113, %115 : vector<8x16xf32>
    %cst_16 = arith.constant 0.000000e+00 : f32
    %117 = vector.broadcast %cst_16 : f32 to vector<8x16xf32>
    %118 = arith.maximumf %116, %117 : vector<8x16xf32>
    %c24 = arith.constant 24 : index
    %119 = memref.load %arg1[%c24] : memref<41xf32, #tpu.memory_space<smem>>
    %120 = vector.broadcast %119 : f32 to vector<8x16xf32>
    %121 = arith.mulf %120, %38 : vector<8x16xf32>
    %cst_17 = arith.constant 0.000000e+00 : f32
    %122 = vector.broadcast %cst_17 : f32 to vector<8x16xf32>
    %123 = arith.addf %122, %121 : vector<8x16xf32>
    %c25 = arith.constant 25 : index
    %124 = memref.load %arg1[%c25] : memref<41xf32, #tpu.memory_space<smem>>
    %125 = vector.broadcast %124 : f32 to vector<8x16xf32>
    %126 = arith.mulf %125, %50 : vector<8x16xf32>
    %127 = arith.addf %123, %126 : vector<8x16xf32>
    %c26 = arith.constant 26 : index
    %128 = memref.load %arg1[%c26] : memref<41xf32, #tpu.memory_space<smem>>
    %129 = vector.broadcast %128 : f32 to vector<8x16xf32>
    %130 = arith.mulf %129, %62 : vector<8x16xf32>
    %131 = arith.addf %127, %130 : vector<8x16xf32>
    %c27 = arith.constant 27 : index
    %132 = memref.load %arg1[%c27] : memref<41xf32, #tpu.memory_space<smem>>
    %133 = vector.broadcast %132 : f32 to vector<8x16xf32>
    %134 = arith.mulf %133, %74 : vector<8x16xf32>
    %135 = arith.addf %131, %134 : vector<8x16xf32>
    %c34 = arith.constant 34 : index
    %136 = memref.load %arg1[%c34] : memref<41xf32, #tpu.memory_space<smem>>
    %137 = vector.broadcast %136 : f32 to vector<8x16xf32>
    %138 = arith.addf %135, %137 : vector<8x16xf32>
    %cst_18 = arith.constant 0.000000e+00 : f32
    %139 = vector.broadcast %cst_18 : f32 to vector<8x16xf32>
    %140 = arith.maximumf %138, %139 : vector<8x16xf32>
    %c28 = arith.constant 28 : index
    %141 = memref.load %arg1[%c28] : memref<41xf32, #tpu.memory_space<smem>>
    %142 = vector.broadcast %141 : f32 to vector<8x16xf32>
    %143 = arith.mulf %142, %38 : vector<8x16xf32>
    %cst_19 = arith.constant 0.000000e+00 : f32
    %144 = vector.broadcast %cst_19 : f32 to vector<8x16xf32>
    %145 = arith.addf %144, %143 : vector<8x16xf32>
    %c29 = arith.constant 29 : index
    %146 = memref.load %arg1[%c29] : memref<41xf32, #tpu.memory_space<smem>>
    %147 = vector.broadcast %146 : f32 to vector<8x16xf32>
    %148 = arith.mulf %147, %50 : vector<8x16xf32>
    %149 = arith.addf %145, %148 : vector<8x16xf32>
    %c30 = arith.constant 30 : index
    %150 = memref.load %arg1[%c30] : memref<41xf32, #tpu.memory_space<smem>>
    %151 = vector.broadcast %150 : f32 to vector<8x16xf32>
    %152 = arith.mulf %151, %62 : vector<8x16xf32>
    %153 = arith.addf %149, %152 : vector<8x16xf32>
    %c31 = arith.constant 31 : index
    %154 = memref.load %arg1[%c31] : memref<41xf32, #tpu.memory_space<smem>>
    %155 = vector.broadcast %154 : f32 to vector<8x16xf32>
    %156 = arith.mulf %155, %74 : vector<8x16xf32>
    %157 = arith.addf %153, %156 : vector<8x16xf32>
    %c35 = arith.constant 35 : index
    %158 = memref.load %arg1[%c35] : memref<41xf32, #tpu.memory_space<smem>>
    %159 = vector.broadcast %158 : f32 to vector<8x16xf32>
    %160 = arith.addf %157, %159 : vector<8x16xf32>
    %cst_20 = arith.constant 0.000000e+00 : f32
    %161 = vector.broadcast %cst_20 : f32 to vector<8x16xf32>
    %162 = arith.maximumf %160, %161 : vector<8x16xf32>
    %c36 = arith.constant 36 : index
    %163 = memref.load %arg1[%c36] : memref<41xf32, #tpu.memory_space<smem>>
    %164 = vector.broadcast %163 : f32 to vector<8x16xf32>
    %165 = arith.mulf %164, %96 : vector<8x16xf32>
    %cst_21 = arith.constant 0.000000e+00 : f32
    %166 = vector.broadcast %cst_21 : f32 to vector<8x16xf32>
    %167 = arith.addf %166, %165 : vector<8x16xf32>
    %c37 = arith.constant 37 : index
    %168 = memref.load %arg1[%c37] : memref<41xf32, #tpu.memory_space<smem>>
    %169 = vector.broadcast %168 : f32 to vector<8x16xf32>
    %170 = arith.mulf %169, %118 : vector<8x16xf32>
    %171 = arith.addf %167, %170 : vector<8x16xf32>
    %c38 = arith.constant 38 : index
    %172 = memref.load %arg1[%c38] : memref<41xf32, #tpu.memory_space<smem>>
    %173 = vector.broadcast %172 : f32 to vector<8x16xf32>
    %174 = arith.mulf %173, %140 : vector<8x16xf32>
    %175 = arith.addf %171, %174 : vector<8x16xf32>
    %c39 = arith.constant 39 : index
    %176 = memref.load %arg1[%c39] : memref<41xf32, #tpu.memory_space<smem>>
    %177 = vector.broadcast %176 : f32 to vector<8x16xf32>
    %178 = arith.mulf %177, %162 : vector<8x16xf32>
    %179 = arith.addf %175, %178 : vector<8x16xf32>
    %c40 = arith.constant 40 : index
    %180 = memref.load %arg1[%c40] : memref<41xf32, #tpu.memory_space<smem>>
    %181 = vector.broadcast %180 : f32 to vector<8x16xf32>
    %182 = arith.addf %179, %181 : vector<8x16xf32>
    %183 = math.tanh %182 : vector<8x16xf32>
    %c0_22 = arith.constant 0 : index
    %c0_23 = arith.constant 0 : index
    %184 = vector.load %arg5[%c0_22, %c0_23] : memref<8x16xf32, #tpu.memory_space<vmem>>, vector<8x16xf32>
    tpu.vector_store %arg5[%c0_22, %c0_23], %183 {strides = array<i32>} : memref<8x16xf32, #tpu.memory_space<vmem>>, vector<8x16xf32>,
    return
  }
  func.func @transform_0(%arg0: i32, %arg1: memref<41xf32, #tpu.memory_space<smem>>) -> (i32, i32) {
    %c0_i32 = arith.constant 0 : i32
    %c0_i32_0 = arith.constant 0 : i32
    return %arg0, %c0_i32 : i32, i32
  }
  func.func @transform_1(%arg0: i32, %arg1: memref<41xf32, #tpu.memory_space<smem>>) -> (i32, i32) {
    %c0_i32 = arith.constant 0 : i32
    %c0_i32_0 = arith.constant 0 : i32
    %c0_i32_1 = arith.constant 0 : i32
    return %c0_i32, %c0_i32_0 : i32, i32
  }
  func.func @transform_2(%arg0: i32, %arg1: memref<41xf32, #tpu.memory_space<smem>>) -> (i32, i32) {
    %c0_i32 = arith.constant 0 : i32
    %c0_i32_0 = arith.constant 0 : i32
    %c0_i32_1 = arith.constant 0 : i32
    return %c0_i32, %c0_i32_0 : i32, i32
  }
  func.func @transform_3(%arg0: i32, %arg1: memref<41xf32, #tpu.memory_space<smem>>) -> (i32, i32) {
    %c0_i32 = arith.constant 0 : i32
    %c0_i32_0 = arith.constant 0 : i32
    return %arg0, %c0_i32 : i32, i32
  }
}

</mosaic_0001>

<bundles_post_ra>
// kernel: tpu_custom_call.1
= control target key start
LH: loop header
LB: loop body
LE: loop exit
PB: predicated region body
PF: predicated region fallthrough
CT: control target
= control target key end

     0   :  { %s768_s0 = inlined_call_operand.vmem [shape: f32[41], index: 0, kind: input, shape index: {}]   ;;  %s769_s1 = inlined_call_operand.vmem [shape: f32[32,32], index: 1, kind: input, shape index: {}]   ;;  %s770_s2 = inlined_call_operand.vmem [shape: f32[32,16], index: 2, kind: input, shape index: {}]   ;;  %s771_s3 = inlined_call_operand.vmem [shape: f32[1,16], index: 3, kind: input, shape index: {}]   ;;  %s772_s4 = inlined_call_operand.vmem [shape: f32[32,16], index: 4, kind: output, shape index: {}]  }
   0x1   :  { %s9_s17 = sshll.u32 %s768_s0, 4  ;;  %s10_s17 = int_to_ptr.vmem [resolvable:$true] %s9_s17 }
   0x2   :  { %s570_s18 = scalar_lea.vmem %s10_s17, 16  ;;  %p575_p1 = scmp.lt.s32.totalorder %s10_s17, %s10_s17 }
   0x3   :  { %p571_p0 = scmp.ne.s32.totalorder %s10_s17, %s570_s18  ;;  %p576_p2 = scmp.lt.s32.totalorder %s570_s18, %s570_s18 }
   0x5   :  { %p577_p3 = por %p576_p2, %p575_p1 }
   0x7   :  { %p578_p4 = pnand %p577_p3, %p571_p0 }
   0x9   :  { %581 = shalt.err (!%p578_p4)  }
   0xa   :  { %s592_s19 = smov [#allocation3]  }
   0xb   :  { %12 = dma.vmem_to_smem %s10_s17, 16, %s592_s19, [#allocation2] }
   0xc   :  { %586 = dma.done.wait [#allocation2], 16 }
   0xd   :  { %587 = vsyncadd [#allocation2], 4294967280 }
   0xe   :  { %14 = sfence }
   0xf   :  { %s624_s20 = smov 0  }
  0x10 LB: > { %s478_s0 = sadd.s32 4294967295, %s590_s20   ;;  %p482_p5 = scmp.ge.s32.totalorder %s590_s20, 1  ;;  %s590_s20 = sphi %s624_s20, %s20_s20  }
  0x11   : > { %p143_p6 = scmp.lt.s32.totalorder %s590_s20, 5 }
  0x13   : > { %p144_p7 = pnand %p482_p5, %p143_p6 }
  0x14   : > { %v174_v0 = vld [vmem:[%s770_s2] sm:$0xff] (!%p144_p7)  ;;  %v175_v1 = vld [vmem:[%s770_s2 + $0x8] sm:$0xff] (!%p144_p7)  ;;  %v176_v2 = vld [vmem:[%s770_s2 + $0x10] sm:$0xff] (!%p144_p7)  ;;  %v593_v3 = vmov (!%p144_p7), 0.0|0.0   ;;  %vm594_vm0 = vmmov (!%p144_p7), 0   ;;  %v595_v6 = vmov (!%p144_p7), 0.0  }
  0x15   : > { %147 = sbr.rel (%p144_p7) target bundleno = 320 (0x140), region = 32  ;;  %546 = vmatprep.subr.bf16.mxu0 (!%p144_p7), %v593_v3  ;;  %v547_v4 = vpack.c.bf16 (!%p144_p7), %v175_v1, %v174_v0  ;;  %v177_v5 = vld [vmem:[%s770_s2 + $0x18] sm:$0xff] (!%p144_p7)  ;;  %543 = vmatprep.mubr.msk.f32.mxu0 (!%p144_p7), %vm594_vm0, %v595_v6  ;;  %p165_p8 = scmp.lt.s32.totalorder (!%p144_p7), %s478_s0, 3  ;;  %vm185_vm1 = vcmask (!%p144_p7), 261120   ;;  %v485_v9 = vld [vmem:[%s771_s3] ss:$0 sm:$0xff] (!%p144_p7) }
  0x16   : > { %v550_v7 = vpack.c.bf16 (!%p144_p7), %v177_v5, %v176_v2  ;;  %s265_s9 = sld [smem:[#allocation3]] (!%p144_p7)  ;;  %s489_s10 = sld [smem:[#allocation3 + $0x1]] (!%p144_p7)  ;;  %vm423_vm2 = vcmask (!%p144_p7), 130048  }
  0x17   : > { %548 = vmatpush3.bf16.msra.mxu0 (!%p144_p7), %v547_v4  ;;  %s488_s11 = sld [smem:[#allocation3 + $0x2]] (!%p144_p7)  ;;  %s490_s12 = sld [smem:[#allocation3 + $0x3]] (!%p144_p7) }
  0x18   : > { %549 = vmatprep.subr.bf16.mxu0 (!%p144_p7), %v593_v3  ;;  %s655_s13 = sld [smem:[#allocation3 + $0x4]] (!%p144_p7)  ;;  %s657_s14 = sld [smem:[#allocation3 + $0x5]] (!%p144_p7) }
  0x19   : > { %s659_s15 = sld [smem:[#allocation3 + $0x6]] (!%p144_p7)  ;;  %s661_s16 = sld [smem:[#allocation3 + $0x7]] (!%p144_p7) }
  0x1a   : > { %s663_s17 = sld [smem:[#allocation3 + $0x8]] (!%p144_p7)  ;;  %s665_s18 = sld [smem:[#allocation3 + $0x9]] (!%p144_p7) }
  0x1b   : > { %551 = vmatpush3.bf16.msra.mxu0 (!%p144_p7), %v550_v7  ;;  %s667_s19 = sld [smem:[#allocation3 + $0xa]] (!%p144_p7)  ;;  %s669_s21 = sld [smem:[#allocation3 + $0xb]] (!%p144_p7) }
  0x1c   : > { %s774_s0 = smov (!%p165_p8, %s478_s0), 3  ;;  %s671_s22 = sld [smem:[#allocation3 + $0xc]]  ;;  %v266_v16 = vstv %s265_s9  ;;  %v273_v17 = vstv %s489_s10 }
  0x1d   : > { %s483_s29 = sshll.u32 %s774_s0, 3  ;;  %s673_s23 = sld [smem:[#allocation3 + $0xd]]  ;;  %v269_v19 = vstv %s488_s11  ;;  %v276_v20 = vstv %s490_s12 }
  0x1e   : > { %s168_s6 = scalar_lea.vmem %s769_s1, %s483_s29  ;;  %s675_s24 = sld [smem:[#allocation3 + $0xe]]  ;;  %v280_v23 = vstv %s655_s13  ;;  %v283_v24 = vstv %s657_s14 }
  0x1f   : > { %v173_v8 = vld [vmem:[%s168_s6] sm:$0xff]  ;;  %s677_s25 = sld [smem:[#allocation3 + $0xf]]  ;;  %s679_s26 = sld [smem:[#allocation3 + $0x10]]  ;;  %v291_v27 = vstv %s659_s15  ;;  %v294_v28 = vstv %s661_s16 }
  0x20   : > { %544 = vmatmul.mubr.msk.f32.vlgmr.msra.gmra.mrb[0].mxu0 %vm185_vm1, %v173_v8  ;;  %s681_s27 = sld [smem:[#allocation3 + $0x11]]  ;;  %s683_s28 = sld [smem:[#allocation3 + $0x12]]  ;;  %v302_v29 = vstv %s663_s17  ;;  %v305_v30 = vstv %s665_s18 }
  0x21   : > { %s685_s30 = sld [smem:[#allocation3 + $0x13]]  ;;  %s689_s5 = sld [smem:[#allocation3 + $0x14]]  ;;  %v313_v31 = vstv %s667_s19  ;;  %v316_v32 = vstv %s669_s21 }
  0x22   : > { %s691_s6 = sld [smem:[#allocation3 + $0x15]]  ;;  %s695_s7 = sld [smem:[#allocation3 + $0x16]]  ;;  %v287_v35 = vstv %s671_s22 }
  0x23   : > { %s697_s8 = sld [smem:[#allocation3 + $0x17]]  ;;  %s703_s9 = sld [smem:[#allocation3 + $0x18]]  ;;  %v298_v36 = vstv %s673_s23 }
  0x24   : > { %s705_s10 = sld [smem:[#allocation3 + $0x19]]  ;;  %s709_s11 = sld [smem:[#allocation3 + $0x1a]]  ;;  %v309_v37 = vstv %s675_s24 }
  0x25   : > { %s711_s12 = sld [smem:[#allocation3 + $0x1b]]  ;;  %v320_v38 = vstv %s677_s25  ;;  %v324_v39 = vstv %s679_s26  ;;  %s717_s13 = sld [smem:[#allocation3 + $0x1c]] }
  0x26   : > { %v328_v40 = vstv %s681_s27  ;;  %s719_s14 = sld [smem:[#allocation3 + $0x1d]]  ;;  %s721_s15 = sld [smem:[#allocation3 + $0x1e]]  ;;  %v332_v51 = vstv %s683_s28 }
  0x27   : > { %s723_s16 = sld [smem:[#allocation3 + $0x1f]]  ;;  %v336_v52 = vstv %s685_s30  ;;  %v344_v55 = vstv %s689_s5  ;;  %s731_s17 = sld [smem:[#allocation3 + $0x20]] }
  0x28   : > { %v348_v56 = vstv %s691_s6  ;;  %v352_v59 = vstv %s695_s7  ;;  %s733_s18 = sld [smem:[#allocation3 + $0x21]]  ;;  %s739_s19 = sld [smem:[#allocation3 + $0x22]] }
  0x29   : > { %v356_v60 = vstv %s697_s8  ;;  %v364_v63 = vstv %s703_s9  ;;  %s743_s21 = sld [smem:[#allocation3 + $0x23]]  ;;  %s747_s22 = sld [smem:[#allocation3 + $0x24]] }
  0x2a   : > { %v368_v0 = vstv %s705_s10  ;;  %v372_v3 = vstv %s709_s11  ;;  %s749_s23 = sld [smem:[#allocation3 + $0x25]]  ;;  %s751_s24 = sld [smem:[#allocation3 + $0x26]] }
  0x2b   : > { %v376_v4 = vstv %s711_s12  ;;  %v384_v7 = vstv %s717_s13  ;;  %s526_s25 = sld [smem:[#allocation3 + $0x27]]  ;;  %s527_s26 = sld [smem:[#allocation3 + $0x28]] }
  0x2c   : > { %v388_v8 = vstv %s719_s14  ;;  %s172_s30 = scalar_lea.vmem %s772_s4, %s483_s29 }
  0xf3   : > { %v255_v10 = vpop.f32.mrb[0].mxu0 }
  0xf4   : > { %v256_v11 = vadd.f32 %v485_v9, %v255_v10  ;;  %v545_v12 = vpop.f32.mrb[1].mxu0 }
  0xf6   : > { %v487_v13 = vmul.f32 -1.442695, %v256_v11 }
  0xf8   : > { %564 = vpow2.f32 %v487_v13 }
 0x102   : > { %v565_v14 = vpop.eup %564 }
 0x103   : > { %v262_v15 = vadd.f32 1.0, %v565_v14 }
 0x105   : > { %566 = vrcp.f32 %v262_v15  ;;  %v392_v15 = vstv %s721_s15 }
 0x10f   : > { %v567_v18 = vpop.eup %566 }
 0x110   : > { %v267_v21 = vmul.f32 %v567_v18, %v266_v16  ;;  %v274_v22 = vmul.f32 %v567_v18, %v273_v17  ;;  %v396_v16 = vstv %s723_s16 }
 0x112   : > { %v270_v25 = vadd.f32 %v269_v19, %v267_v21  ;;  %v277_v26 = vadd.f32 %v276_v20, %v274_v22 }
 0x114   : > { %v271_v33 = vmax.f32 %v270_v25, 0.0  ;;  %v278_v34 = vmax.f32 %v277_v26, 0.0 }
 0x116   : > { %v281_v41 = vmul.f32 %v280_v23, %v271_v33  ;;  %v284_v42 = vmul.f32 %v283_v24, %v278_v34  ;;  %v292_v43 = vmul.f32 %v291_v27, %v271_v33  ;;  %v295_v44 = vmul.f32 %v294_v28, %v278_v34 }
 0x117   : > { %v303_v45 = vmul.f32 %v302_v29, %v271_v33  ;;  %v306_v46 = vmul.f32 %v305_v30, %v278_v34  ;;  %v314_v47 = vmul.f32 %v313_v31, %v271_v33  ;;  %v317_v48 = vmul.f32 %v316_v32, %v278_v34 }
 0x118   : > { %v285_v49 = vadd.f32 %v284_v42, %v281_v41  ;;  %v296_v50 = vadd.f32 %v295_v44, %v292_v43  ;;  %v340_v29 = vstv %s731_s17  ;;  %v360_v30 = vstv %s733_s18 }
 0x119   : > { %v307_v53 = vadd.f32 %v306_v46, %v303_v45  ;;  %v318_v54 = vadd.f32 %v317_v48, %v314_v47  ;;  %v400_v43 = vstv %s743_s21  ;;  %v404_v45 = vstv %s747_s22 }
 0x11a   : > { %v288_v57 = vadd.f32 %v287_v35, %v285_v49  ;;  %v299_v58 = vadd.f32 %v298_v36, %v296_v50  ;;  %v408_v46 = vstv %s749_s23 }
 0x11b   : > { %v310_v61 = vadd.f32 %v309_v37, %v307_v53  ;;  %v321_v62 = vadd.f32 %v320_v38, %v318_v54  ;;  %v380_v37 = vstv %s739_s19 }
 0x11c   : > { %v289_v1 = vmax.f32 %v288_v57, 0.0  ;;  %v300_v2 = vmax.f32 %v299_v58, 0.0 }
 0x11d   : > { %v311_v5 = vmax.f32 %v310_v61, 0.0  ;;  %v322_v6 = vmax.f32 %v321_v62, 0.0  ;;  %v420_v61 = vstv %s527_s26 }
 0x11e   : > { %v325_v9 = vmul.f32 %v324_v39, %v289_v1  ;;  %v329_v10 = vmul.f32 %v328_v40, %v300_v2  ;;  %v345_v11 = vmul.f32 %v344_v55, %v289_v1  ;;  %v349_v12 = vmul.f32 %v348_v56, %v300_v2 }
 0x11f   : > { %v333_v13 = vmul.f32 %v332_v51, %v311_v5  ;;  %v353_v14 = vmul.f32 %v352_v59, %v311_v5  ;;  %v365_v19 = vmul.f32 %v364_v63, %v289_v1  ;;  %v369_v20 = vmul.f32 %v368_v0, %v300_v2 }
 0x120   : > { %v330_v17 = vadd.f32 %v329_v10, %v325_v9  ;;  %v350_v18 = vadd.f32 %v349_v12, %v345_v11  ;;  %v337_v21 = vmul.f32 %v336_v52, %v322_v6  ;;  %v357_v22 = vmul.f32 %v356_v60, %v322_v6 }
 0x121   : > { %v385_v23 = vmul.f32 %v384_v7, %v289_v1  ;;  %v389_v24 = vmul.f32 %v388_v8, %v300_v2  ;;  %v370_v27 = vadd.f32 %v369_v20, %v365_v19  ;;  %v373_v28 = vmul.f32 %v372_v3, %v311_v5 }
 0x122   : > { %v334_v25 = vadd.f32 %v333_v13, %v330_v17  ;;  %v354_v26 = vadd.f32 %v353_v14, %v350_v18  ;;  %v393_v32 = vmul.f32 %v392_v15, %v311_v5  ;;  %v377_v36 = vmul.f32 %v376_v4, %v322_v6 }
 0x123   : > { %v390_v31 = vadd.f32 %v389_v24, %v385_v23  ;;  %v374_v35 = vadd.f32 %v373_v28, %v370_v27  ;;  %v397_v39 = vmul.f32 %v396_v16, %v322_v6  ;;  %v412_v51 = vstv %s751_s24 }
 0x124   : > { %v338_v33 = vadd.f32 %v337_v21, %v334_v25  ;;  %v358_v34 = vadd.f32 %v357_v22, %v354_v26  ;;  %v416_v56 = vstv %s526_s25 }
 0x125   : > { %v394_v38 = vadd.f32 %v393_v32, %v390_v31  ;;  %v378_v42 = vadd.f32 %v377_v36, %v374_v35 }
 0x126   : > { %v341_v40 = vadd.f32 %v340_v29, %v338_v33  ;;  %v361_v41 = vadd.f32 %v360_v30, %v358_v34 }
 0x127   : > { %v398_v44 = vadd.f32 %v397_v39, %v394_v38  ;;  %v381_v49 = vadd.f32 %v380_v37, %v378_v42 }
 0x128   : > { %v342_v47 = vmax.f32 %v341_v40, 0.0  ;;  %v362_v48 = vmax.f32 %v361_v41, 0.0 }
 0x129   : > { %v401_v50 = vadd.f32 %v400_v43, %v398_v44  ;;  %v382_v52 = vmax.f32 %v381_v49, 0.0 }
 0x12a   : > { %v405_v53 = vmul.f32 %v404_v45, %v342_v47  ;;  %v409_v54 = vmul.f32 %v408_v46, %v362_v48 }
 0x12b   : > { %v402_v55 = vmax.f32 %v401_v50, 0.0  ;;  %v413_v58 = vmul.f32 %v412_v51, %v382_v52 }
 0x12c   : > { %v410_v57 = vadd.f32 %v409_v54, %v405_v53 }
 0x12d   : > { %v417_v60 = vmul.f32 %v416_v56, %v402_v55 }
 0x12e   : > { %v414_v59 = vadd.f32 %v413_v58, %v410_v57 }
 0x130   : > { %v418_v62 = vadd.f32 %v417_v60, %v414_v59 }
 0x132   : > { %v421_v63 = vadd.f32 %v420_v61, %v418_v62 }
 0x134   : > { %568 = vtanh.f32 %v421_v63 }
 0x13e   : > { %v569_v0 = vpop.eup %568 }
 0x13f   : > { %424 = vst.msk [vmem:[%s172_s30] sm:$0xff] %vm423_vm2, %v569_v0 }
 0x140 PF: > { %s20_s20 = sadd.s32 1, %s590_s20  }
 0x141   : > { %p17_p9 = scmp.ge.s32.totalorder %s20_s20, 6  }
 0x143   :  { %19 = sbr.rel (!%p17_p9) target bundleno = 16 (0x10), region = 62 }

</bundles_post_ra>
